<compile_context>
chip_gen: v7x
topology: tpu7x:2x2x1
jax: 0.10.0
libtpu: 0.0.40
codegen_flags: <defaults>
</compile_context>

<pallas_src>
import functools

import jax
import jax.numpy as jnp
import numpy as np
from jax.experimental import pallas as pl
from jax.experimental.pallas import tpu as pltpu

_ROW_ALIGN = 16  # bf16 sublane packing (2 rows / sublane * 8 sublanes)


def _round_up(x, m):
    return (x + m - 1) // m * m


# ----------------------------- Pallas kernel --------------------------------
def _make_mlp_kernel(num_hidden):
    """Kernel over one row tile: runs the full MLP stack for that tile."""

    def kernel(x_ref, *refs):
        out_ref = refs[-1]
        # Layer 0: relu(x @ W0 + b0); bf16 MXU inputs, f32 accumulation.
        h = jnp.dot(x_ref[...], refs[0][...], preferred_element_type=jnp.float32)
        h = jnp.maximum(h + refs[1][...], 0.0)
        # Hidden layers: relu(h @ Wi + bi); re-cast activations to bf16 for MXU.
        for l in range(num_hidden):
            w_ref = refs[2 + 2 * l]
            b_ref = refs[3 + 2 * l]
            h = jnp.dot(
                h.astype(jnp.bfloat16), w_ref[...],
                preferred_element_type=jnp.float32,
            )
            h = jnp.maximum(h + b_ref[...], 0.0)
            # TODO(synk): training-mode Dropout (mask via pltpu.prng_random_bits)
            # not implemented; eval-mode (identity) semantics are used.
        # Output layer: h @ Wout + bout (no activation).
        w_ref = refs[2 + 2 * num_hidden]
        b_ref = refs[3 + 2 * num_hidden]
        out_ref[...] = (
            jnp.dot(
                h.astype(jnp.bfloat16), w_ref[...],
                preferred_element_type=jnp.float32,
            )
            + b_ref[...]
        )

    return kernel


# ------------------------ one-time parameter prep ----------------------------
def prepare_params(weights, biases):
    """Pad (to 128-lane feature dims) and cast weights to bf16 ONCE.

    Layer 0 keeps its true input width (x is fed with a full-extent K block);
    every output dim is padded to a multiple of 128. Biases stay f32.
    Returns a flat tuple (W0, b0, W1, b1, ..., Wout, bout).
    """
    flat = []
    in_dim = weights[0].shape[0]  # unpadded: matches the unpadded x block
    for w, b in zip(weights, biases):
        out_dim = _round_up(w.shape[1], 128)
        wp = jnp.zeros((in_dim, out_dim), jnp.bfloat16)
        wp = wp.at[: w.shape[0], : w.shape[1]].set(w.astype(jnp.bfloat16))
        bp = jnp.zeros((1, out_dim), jnp.float32)
        bp = bp.at[0, : b.shape[0]].set(b.astype(jnp.float32))
        flat.extend([wp, bp])
        in_dim = out_dim
    return tuple(flat)


# ------------------------------ forward --------------------------------------
@functools.partial(jax.jit, static_argnames=("output_neurons", "row_tile"))
def net_forward(x, flat_params, *, output_neurons, row_tile=512):
    """MLP forward. flat_params comes from prepare_params()."""
    num_hidden = len(flat_params) // 2 - 2
    f_in = flat_params[0].shape[0]       # true (unpadded) input width
    n_out_pad = flat_params[-1].shape[1]  # padded output width

    x2d = x.reshape(-1, f_in).astype(jnp.bfloat16)
    m = x2d.shape[0]

    # --- row tiling: >=2 tiles when possible so both v7x TCs get work --------
    m_pad = _round_up(m, _ROW_ALIGN)
    if m_pad <= _ROW_ALIGN:
        tm = m_pad
    else:
        tm = min(row_tile, _round_up(pl.cdiv(m_pad, 2), _ROW_ALIGN))
        m_pad = _round_up(m_pad, tm)
    grid = (m_pad // tm,)

    if m_pad == m:
        x_p = x2d
    else:
        x_p = jnp.zeros((m_pad, f_in), jnp.bfloat16).at[:m].set(x2d)

    # x: full-extent K block (exempt from the 128-lane rule since it equals the
    # full array dim); weights/biases: full blocks, VMEM-resident (constant map).
    in_specs = [pl.BlockSpec((tm, f_in), lambda i: (i, 0))]
    for p in flat_params:
        in_specs.append(pl.BlockSpec(p.shape, lambda i: (0, 0)))

    out_p = pl.pallas_call(
        _make_mlp_kernel(num_hidden),
        out_shape=jax.ShapeDtypeStruct((m_pad, n_out_pad), jnp.float32),
        grid=grid,
        in_specs=in_specs,
        out_specs=pl.BlockSpec((tm, n_out_pad), lambda i: (i, 0)),
        compiler_params=pltpu.CompilerParams(
            dimension_semantics=("parallel",),
        ),
    )(x_p, *flat_params)

    return out_p[:m, :output_neurons]


# ------------------------------ references -----------------------------------
def reference_forward_f32(x, weights, biases):
    """Pure f32 reference (module semantics, eval mode)."""
    h = x.reshape(-1, weights[0].shape[0]).astype(jnp.float32)
    for i, (w, b) in enumerate(zip(weights, biases)):
        h = h @ w.astype(jnp.float32) + b.astype(jnp.float32)
        if i < len(weights) - 1:
            h = jnp.maximum(h, 0.0)  # Dropout is identity at inference.
    return h


def reference_forward_bf16(x, weights, biases):
    """Reference matching the kernel's arithmetic: bf16 inputs, f32 accumulate."""
    def q(a):
        return a.astype(jnp.bfloat16).astype(jnp.float32)

    h = q(x.reshape(-1, weights[0].shape[0]))
    for i, (w, b) in enumerate(zip(weights, biases)):
        h = h @ q(w) + b.astype(jnp.float32)
        if i < len(weights) - 1:
            h = jnp.maximum(h, 0.0)
            h = q(h)
    return h


def init_params(key, input_neurons, output_neurons, hidden_layers, neurons_per_layer):
    """Deterministic nn.Linear-style (uniform +-1/sqrt(fan_in)) init."""
    dims = [input_neurons] + [neurons_per_layer] * (hidden_layers + 1) + [output_neurons]
    weights, biases = [], []
    for i in range(len(dims) - 1):
        key, kw, kb = jax.random.split(key, 3)
        bound = float(1.0 / np.sqrt(dims[i]))
        weights.append(
            jax.random.uniform(kw, (dims[i], dims[i + 1]), jnp.float32, -bound, bound)
        )
        biases.append(
            jax.random.uniform(kb, (dims[i + 1],), jnp.float32, -bound, bound)
        )
    return weights, biases


if __name__ == "__main__":
    # Small shapes consistent with the module:
    #   input_neurons=48, neurons_per_layer=96, output_neurons=10, hidden_layers=2
    #   x: (4, 6, 48) -> view(-1, 48) gives 24 rows.
    input_neurons, output_neurons = 48, 10
    hidden_layers, neurons_per_layer, dropout = 2, 96, 0.5

    key = jax.random.PRNGKey(0)
    kx, kp = jax.random.split(key)
    x = jax.random.normal(kx, (4, 6, input_neurons), jnp.float32)
    weights, biases = init_params(
        kp, input_neurons, output_neurons, hidden_layers, neurons_per_layer
    )

    # One-time padding/cast of parameters (hoisted out of the per-call path).
    flat_params = prepare_params(weights, biases)

    out = jax.block_until_ready(
        net_forward(x, flat_params, output_neurons=output_neurons)
    )
    assert out.shape == (4 * 6, output_neurons)

    # Tight check vs. a reference using the same bf16-input / f32-accumulate math.
    ref_bf16 = reference_forward_bf16(x, weights, biases)
    np.testing.assert_allclose(
        np.asarray(out), np.asarray(ref_bf16), rtol=2e-3, atol=2e-3
    )
    # Loose sanity check vs. the pure f32 module semantics (bf16 input rounding).
    ref_f32 = reference_forward_f32(x, weights, biases)
    np.testing.assert_allclose(
        np.asarray(out), np.asarray(ref_f32), rtol=5e-2, atol=5e-2
    )

    print("KERNEL_OK")
</pallas_src>

<mosaic_0001>
module attributes {stable_mosaic.version = 11 : i64} {
  func.func @kernel(%arg0: i32, %arg1: memref<16x48xbf16, #tpu.memory_space<vmem>>, %arg2: memref<48x128xbf16, #tpu.memory_space<vmem>>, %arg3: memref<1x128xf32, #tpu.memory_space<vmem>>, %arg4: memref<128x128xbf16, #tpu.memory_space<vmem>>, %arg5: memref<1x128xf32, #tpu.memory_space<vmem>>, %arg6: memref<128x128xbf16, #tpu.memory_space<vmem>>, %arg7: memref<1x128xf32, #tpu.memory_space<vmem>>, %arg8: memref<128x128xbf16, #tpu.memory_space<vmem>>, %arg9: memref<1x128xf32, #tpu.memory_space<vmem>>, %arg10: memref<16x128xf32, #tpu.memory_space<vmem>>) attributes {dimension_semantics = [#tpu.dimension_semantics<parallel>], iteration_bounds = array<i64: 2>, scalar_prefetch = 0 : i64, scratch_operands = 0 : i64, tpu.core_type = #tpu.core_type<tc>, window_params = [{transform_indices = @transform_0, window_bounds = array<i64: 16, 48>}, {pipeline_mode = #tpu.pipeline_mode<synchronous>, transform_indices = @transform_1, window_bounds = array<i64: 48, 128>}, {pipeline_mode = #tpu.pipeline_mode<synchronous>, transform_indices = @transform_2, window_bounds = array<i64: 1, 128>}, {pipeline_mode = #tpu.pipeline_mode<synchronous>, transform_indices = @transform_3, window_bounds = array<i64: 128, 128>}, {pipeline_mode = #tpu.pipeline_mode<synchronous>, transform_indices = @transform_4, window_bounds = array<i64: 1, 128>}, {pipeline_mode = #tpu.pipeline_mode<synchronous>, transform_indices = @transform_5, window_bounds = array<i64: 128, 128>}, {pipeline_mode = #tpu.pipeline_mode<synchronous>, transform_indices = @transform_6, window_bounds = array<i64: 1, 128>}, {pipeline_mode = #tpu.pipeline_mode<synchronous>, transform_indices = @transform_7, window_bounds = array<i64: 128, 128>}, {pipeline_mode = #tpu.pipeline_mode<synchronous>, transform_indices = @transform_8, window_bounds = array<i64: 1, 128>}, {transform_indices = @transform_9, window_bounds = array<i64: 16, 128>}]} {
    %c0 = arith.constant 0 : index
    %c0_0 = arith.constant 0 : index
    %0 = vector.load %arg1[%c0, %c0_0] : memref<16x48xbf16, #tpu.memory_space<vmem>>, vector<16x48xbf16>
    %c0_1 = arith.constant 0 : index
    %c0_2 = arith.constant 0 : index
    %1 = vector.load %arg2[%c0_1, %c0_2] : memref<48x128xbf16, #tpu.memory_space<vmem>>, vector<48x128xbf16>
    %cst = arith.constant dense<0.000000e+00> : vector<16x128xf32>
    %2 = tpu.matmul %0, %1, %cst {dimension_numbers = #tpu.dot_dimension_numbers<[1], [0], [0], [1], [0, 0, 1, 1], [], []>} : vector<16x48xbf16>, vector<48x128xbf16>, vector<16x128xf32> -> vector<16x128xf32>
    %c0_3 = arith.constant 0 : index
    %c0_4 = arith.constant 0 : index
    %3 = vector.load %arg3[%c0_3, %c0_4] : memref<1x128xf32, #tpu.memory_space<vmem>>, vector<1x128xf32>
    %4 = vector.broadcast %3 : vector<1x128xf32> to vector<16x128xf32>
    %5 = arith.addf %2, %4 : vector<16x128xf32>
    %cst_5 = arith.constant 0.000000e+00 : f32
    %6 = vector.broadcast %cst_5 : f32 to vector<16x128xf32>
    %7 = arith.maximumf %5, %6 : vector<16x128xf32>
    %8 = arith.truncf %7 : vector<16x128xf32> to vector<16x128xbf16>
    %c0_6 = arith.constant 0 : index
    %c0_7 = arith.constant 0 : index
    %9 = vector.load %arg4[%c0_6, %c0_7] : memref<128x128xbf16, #tpu.memory_space<vmem>>, vector<128x128xbf16>
    %cst_8 = arith.constant dense<0.000000e+00> : vector<16x128xf32>
    %10 = tpu.matmul %8, %9, %cst_8 {dimension_numbers = #tpu.dot_dimension_numbers<[1], [0], [0], [1], [0, 0, 1, 1], [], []>} : vector<16x128xbf16>, vector<128x128xbf16>, vector<16x128xf32> -> vector<16x128xf32>
    %c0_9 = arith.constant 0 : index
    %c0_10 = arith.constant 0 : index
    %11 = vector.load %arg5[%c0_9, %c0_10] : memref<1x128xf32, #tpu.memory_space<vmem>>, vector<1x128xf32>
    %12 = vector.broadcast %11 : vector<1x128xf32> to vector<16x128xf32>
    %13 = arith.addf %10, %12 : vector<16x128xf32>
    %cst_11 = arith.constant 0.000000e+00 : f32
    %14 = vector.broadcast %cst_11 : f32 to vector<16x128xf32>
    %15 = arith.maximumf %13, %14 : vector<16x128xf32>
    %16 = arith.truncf %15 : vector<16x128xf32> to vector<16x128xbf16>
    %c0_12 = arith.constant 0 : index
    %c0_13 = arith.constant 0 : index
    %17 = vector.load %arg6[%c0_12, %c0_13] : memref<128x128xbf16, #tpu.memory_space<vmem>>, vector<128x128xbf16>
    %cst_14 = arith.constant dense<0.000000e+00> : vector<16x128xf32>
    %18 = tpu.matmul %16, %17, %cst_14 {dimension_numbers = #tpu.dot_dimension_numbers<[1], [0], [0], [1], [0, 0, 1, 1], [], []>} : vector<16x128xbf16>, vector<128x128xbf16>, vector<16x128xf32> -> vector<16x128xf32>
    %c0_15 = arith.constant 0 : index
    %c0_16 = arith.constant 0 : index
    %19 = vector.load %arg7[%c0_15, %c0_16] : memref<1x128xf32, #tpu.memory_space<vmem>>, vector<1x128xf32>
    %20 = vector.broadcast %19 : vector<1x128xf32> to vector<16x128xf32>
    %21 = arith.addf %18, %20 : vector<16x128xf32>
    %cst_17 = arith.constant 0.000000e+00 : f32
    %22 = vector.broadcast %cst_17 : f32 to vector<16x128xf32>
    %23 = arith.maximumf %21, %22 : vector<16x128xf32>
    %24 = arith.truncf %23 : vector<16x128xf32> to vector<16x128xbf16>
    %c0_18 = arith.constant 0 : index
    %c0_19 = arith.constant 0 : index
    %25 = vector.load %arg8[%c0_18, %c0_19] : memref<128x128xbf16, #tpu.memory_space<vmem>>, vector<128x128xbf16>
    %cst_20 = arith.constant dense<0.000000e+00> : vector<16x128xf32>
    %26 = tpu.matmul %24, %25, %cst_20 {dimension_numbers = #tpu.dot_dimension_numbers<[1], [0], [0], [1], [0, 0, 1, 1], [], []>} : vector<16x128xbf16>, vector<128x128xbf16>, vector<16x128xf32> -> vector<16x128xf32>
    %c0_21 = arith.constant 0 : index
    %c0_22 = arith.constant 0 : index
    %27 = vector.load %arg9[%c0_21, %c0_22] : memref<1x128xf32, #tpu.memory_space<vmem>>, vector<1x128xf32>
    %28 = vector.broadcast %27 : vector<1x128xf32> to vector<16x128xf32>
    %29 = arith.addf %26, %28 : vector<16x128xf32>
    %c0_23 = arith.constant 0 : index
    %c0_24 = arith.constant 0 : index
    %30 = vector.load %arg10[%c0_23, %c0_24] : memref<16x128xf32, #tpu.memory_space<vmem>>, vector<16x128xf32>
    tpu.vector_store %arg10[%c0_23, %c0_24], %29 {strides = array<i32>} : memref<16x128xf32, #tpu.memory_space<vmem>>, vector<16x128xf32>,
    return
  }
  func.func @transform_0(%arg0: i32) -> (i32, i32) {
    %c0_i32 = arith.constant 0 : i32
    %c0_i32_0 = arith.constant 0 : i32
    return %arg0, %c0_i32 : i32, i32
  }
  func.func @transform_1(%arg0: i32) -> (i32, i32) {
    %c0_i32 = arith.constant 0 : i32
    %c0_i32_0 = arith.constant 0 : i32
    %c0_i32_1 = arith.constant 0 : i32
    return %c0_i32, %c0_i32_0 : i32, i32
  }
  func.func @transform_2(%arg0: i32) -> (i32, i32) {
    %c0_i32 = arith.constant 0 : i32
    %c0_i32_0 = arith.constant 0 : i32
    %c0_i32_1 = arith.constant 0 : i32
    return %c0_i32, %c0_i32_0 : i32, i32
  }
  func.func @transform_3(%arg0: i32) -> (i32, i32) {
    %c0_i32 = arith.constant 0 : i32
    %c0_i32_0 = arith.constant 0 : i32
    %c0_i32_1 = arith.constant 0 : i32
    return %c0_i32, %c0_i32_0 : i32, i32
  }
  func.func @transform_4(%arg0: i32) -> (i32, i32) {
    %c0_i32 = arith.constant 0 : i32
    %c0_i32_0 = arith.constant 0 : i32
    %c0_i32_1 = arith.constant 0 : i32
    return %c0_i32, %c0_i32_0 : i32, i32
  }
  func.func @transform_5(%arg0: i32) -> (i32, i32) {
    %c0_i32 = arith.constant 0 : i32
    %c0_i32_0 = arith.constant 0 : i32
    %c0_i32_1 = arith.constant 0 : i32
    return %c0_i32, %c0_i32_0 : i32, i32
  }
  func.func @transform_6(%arg0: i32) -> (i32, i32) {
    %c0_i32 = arith.constant 0 : i32
    %c0_i32_0 = arith.constant 0 : i32
    %c0_i32_1 = arith.constant 0 : i32
    return %c0_i32, %c0_i32_0 : i32, i32
  }
  func.func @transform_7(%arg0: i32) -> (i32, i32) {
    %c0_i32 = arith.constant 0 : i32
    %c0_i32_0 = arith.constant 0 : i32
    %c0_i32_1 = arith.constant 0 : i32
    return %c0_i32, %c0_i32_0 : i32, i32
  }
  func.func @transform_8(%arg0: i32) -> (i32, i32) {
    %c0_i32 = arith.constant 0 : i32
    %c0_i32_0 = arith.constant 0 : i32
    %c0_i32_1 = arith.constant 0 : i32
    return %c0_i32, %c0_i32_0 : i32, i32
  }
  func.func @transform_9(%arg0: i32) -> (i32, i32) {
    %c0_i32 = arith.constant 0 : i32
    %c0_i32_0 = arith.constant 0 : i32
    return %arg0, %c0_i32 : i32, i32
  }
}

</mosaic_0001>

<bundles_post_ra>
// kernel: net_forward.1
= control target key start
LH: loop header
LB: loop body
LE: loop exit
PB: predicated region body
PF: predicated region fallthrough
CT: control target
= control target key end

     0   :  { %14 = vsyncpa [#allocation3], 0  ;;  %s1492_s0 = inlined_call_operand.vmem [shape: bf16[32,48], index: 0, kind: input, shape index: {}]   ;;  %s1493_s1 = inlined_call_operand.hbm [shape: bf16[48,128], index: 1, kind: input, shape index: {}]   ;;  %s1494_s2 = inlined_call_operand.hbm [shape: f32[1,128], index: 2, kind: input, shape index: {}]   ;;  %s1495_s3 = inlined_call_operand.vmem [shape: bf16[128,128], index: 3, kind: input, shape index: {}]   ;;  %s1496_s4 = inlined_call_operand.vmem [shape: f32[1,128], index: 4, kind: input, shape index: {}]   ;;  %s1497_s5 = inlined_call_operand.vmem [shape: bf16[128,128], index: 5, kind: input, shape index: {}]   ;;  %s1498_s6 = inlined_call_operand.vmem [shape: f32[1,128], index: 6, kind: input, shape index: {}]   ;;  %s1499_s7 = inlined_call_operand.hbm [shape: bf16[128,128], index: 7, kind: input, shape index: {}]   ;;  %s1500_s8 = inlined_call_operand.vmem [shape: f32[1,128], index: 8, kind: input, shape index: {}]   ;;  %s1501_s9 = inlined_call_operand.vmem [shape: f32[32,128], index: 9, kind: output, shape index: {}]  }
   0x1   :  { %15 = vsyncpa [#allocation5], 0  ;;  %s1275_s30 = smov 0  }
   0x2 LB: > { %s1218_s10 = smov [#allocation4]   ;;  %s896_s12 = sadd.s32 4294967295, %s1216_s30   ;;  %s1216_s30 = sphi %s1275_s30, %s21_s30  }
   0x3   : > { %s272_s11 = sshll.u32 %s1218_s10, 4  ;;  %p898_p0 = scmp.ge.s32.totalorder %s1216_s30, 1  ;;  %s273_s11 = int_to_ptr.vmem [resolvable:$true] %s272_s11 }
   0x4   : > { %p246_p1 = scmp.lt.s32.totalorder %s1216_s30, 3  ;;  %p1285_p2 = scmp.eq.s32.totalorder %s896_s12, 0 }
   0x5   : > { %s1219_s15 = smov [#allocation2]   ;;  %s1220_s18 = smov [#allocation6]  }
   0x6   : > { %s1505_s13 = scalar_select %p1285_p2, 1, 0 }
   0x7   : > { %p1289_p3 = pnand %p898_p0, %p246_p1  ;;  %s258_s16 = sshll.u32 %s1219_s15, 4  ;;  %s1301_s16 = int_to_ptr.vmem [resolvable:$true] %s258_s16 }
   0x8   : > { %s294_s19 = sshll.u32 %s1220_s18, 4  ;;  %s1118_s22 = scalar_lea.hbm %s1494_s2, 16  ;;  %s1303_s19 = int_to_ptr.vmem [resolvable:$true] %s294_s19 }
   0x9   : > { %s1506_s14 = scalar_select %p1289_p3, 1, 0 }
   0xa   : > { %p1059_p4 = pneg %p1289_p3  ;;  %p1119_p6 = scmp.ne.s32.totalorder %s1494_s2, %s1118_s22 }
   0xb   : > { %p1125_p10 = scmp.lt.u32.totalorder %s1118_s22, %s1494_s2 }
   0xc   : > { %p1297_p5 = pnand %p1285_p2, %p1059_p4 }
   0xe   : > { %p1313_p7 = pneg %p1297_p5 }
  0x10   : > { %p1121_p8 = pnand %p1313_p7, %p1119_p6 }
  0x12   : > { %p1122_p9 = pneg %p1121_p8 }
  0x14   : > { %p1127_p11 = pnand %p1125_p10, %p1122_p9 }
  0x16   : > { %1130 = shalt.err (!%p1127_p11)
}
  0x17   : > { %s1131_s28 = scalar_lea.vmem %s273_s11, 16  ;;  %s1138_s29 = scalar_lea.vmem %s273_s11, 32 }
  0x18   : > { %p1132_p12 = scmp.ne.s32.totalorder %s273_s11, %s1131_s28  ;;  %p1139_p1 = scmp.lt.s32.totalorder %s273_s11, %s273_s11 }
  0x19   : > { %p1140_p4 = scmp.lt.s32.totalorder %s1138_s29, %s1131_s28 }
  0x1a   : > { %p1134_p13 = pnand %p1132_p12, %p1313_p7 }
  0x1b   : > { %p1141_p2 = por %p1140_p4, %p1139_p1 }
  0x1c   : > { %p1135_p0 = pneg %p1134_p13 }
  0x1e   : > { %p1142_p3 = pnand %p1141_p2, %p1135_p0 }
  0x20   : > { %1145 = shalt.err (!%p1142_p3)
}
  0x21   : > { %1065 = dma.hbm_to_vmem [thread:$0]  (!%p1297_p5), %s1494_s2, 16, %s273_s11, [#allocation5]  }
  0x22   : > { %s1146_s21 = scalar_lea.hbm %s1493_s1, 384 }
  0x23   : > { %p1147_p6 = scmp.ne.s32.totalorder %s1493_s1, %s1146_s21  ;;  %p1153_p2 = scmp.lt.u32.totalorder %s1146_s21, %s1493_s1 }
  0x25   : > { %p1149_p8 = pnand %p1147_p6, %p1313_p7 }
  0x27   : > { %p1150_p9 = pneg %p1149_p8 }
  0x29   : > { %p1155_p3 = pnand %p1153_p2, %p1150_p9 }
  0x2b   : > { %1158 = shalt.err (!%p1155_p3)
}
  0x2c   : > { %s1159_s11 = scalar_lea.vmem %s1301_s16, 384  ;;  %p1167_p13 = scmp.lt.s32.totalorder %s1301_s16, %s1301_s16 }
  0x2d   : > { %p1160_p10 = scmp.ne.s32.totalorder %s1301_s16, %s1159_s11  ;;  %p1168_p0 = scmp.lt.s32.totalorder %s1159_s11, %s1159_s11 }
  0x2f   : > { %p1162_p11 = pnand %p1160_p10, %p1313_p7  ;;  %p1169_p1 = por %p1168_p0, %p1167_p13 }
  0x31   : > { %p1163_p12 = pneg %p1162_p11 }
  0x33   : > { %p1170_p4 = pnand %p1169_p1, %p1163_p12 }
  0x35   : > { %1173 = shalt.err (!%p1170_p4)
}
  0x36   : > { %s1221_s27 = smov 64   ;;  %s1222_s28 = smov 4  }
  0x37   : > { %1062 = dma.hbm_to_vmem [thread:$0]  (!%p1297_p5), %s1493_s1, 384, %s1301_s16, [#allocation3], %s1221_s27, %s1221_s27, %s1222_s28  }
  0x38   : > { %s1174_s20 = scalar_lea.hbm %s1499_s7, 1024 }
  0x39   : > { %p1175_p6 = scmp.ne.s32.totalorder %s1499_s7, %s1174_s20  ;;  %p1181_p2 = scmp.lt.u32.totalorder %s1174_s20, %s1499_s7 }
  0x3b   : > { %p1177_p8 = pnand %p1175_p6, %p1313_p7 }
  0x3d   : > { %p1178_p9 = pneg %p1177_p8 }
  0x3f   : > { %p1183_p3 = pnand %p1181_p2, %p1178_p9 }
  0x41   : > { %1186 = shalt.err (!%p1183_p3)
}
  0x42   : > { %s1187_s16 = scalar_lea.vmem %s1303_s19, 1024  ;;  %p1195_p13 = scmp.lt.s32.totalorder %s1303_s19, %s1303_s19 }
  0x43   : > { %p1188_p10 = scmp.ne.s32.totalorder %s1303_s19, %s1187_s16  ;;  %p1196_p0 = scmp.lt.s32.totalorder %s1187_s16, %s1187_s16 }
  0x45   : > { %p1190_p11 = pnand %p1188_p10, %p1313_p7  ;;  %p1197_p1 = por %p1196_p0, %p1195_p13 }
  0x47   : > { %p1191_p12 = pneg %p1190_p11 }
  0x49   : > { %p1198_p4 = pnand %p1197_p1, %p1191_p12 }
  0x4b   : > { %1201 = shalt.err (!%p1198_p4)
}
  0x4c   : > { %1068 = dma.hbm_to_vmem [thread:$0]  (!%p1297_p5), %s1499_s7, 1024, %s1303_s19, [#allocation5], %s1221_s27, %s1221_s27, %s1222_s28  }
  0x4d   : > { %p1509_p6 = scmp.ne.s32.totalorder %s1506_s14, 0 }
  0x4e   : > { %p1510_p8 = scmp.ne.s32.totalorder (!%p1509_p6), %s1505_s13, 0 }
  0x4f   : > { %322 = sbr.rel (%p1509_p6) target bundleno = 980 (0x3d4), region = 56 }
  0x56   : > { %1207 = dma.done.wait (%p1510_p8), [#allocation3], 384  }
  0x57   : > { %1209 = vsyncadd (%p1510_p8), [#allocation3], 4294966912 }
  0x58   : > { %1211 = dma.done.wait (%p1510_p8), [#allocation5], 1040  }
  0x59   : > { %1213 = vsyncadd (%p1510_p8), [#allocation5], 4294966256  ;;  %s907_s17 = sshll.u32 %s896_s12, 1  ;;  %v1223_v0 = vmov 0.0   ;;  %vm1224_vm0 = vmmov 0   ;;  %v1090_v1 = vld [vmem:[#allocation2] sm:$0xff]  }
  0x5a   : > { %977 = vmatprep.subr.bf16.mxu0 %v1223_v0  ;;  %983 = vmatprep.mubr.msk.bf16.mxu0 %vm1224_vm0, %v1223_v0  ;;  %p367_p5 = scmp.lt.s32.totalorder %s907_s17, 3  ;;  %v1091_v2 = vld [vmem:[#allocation2 + $0x8] sm:$0xff]   ;;  %v1094_v3 = vld [vmem:[%s1495_s3] sm:$0xff]   ;;  %v1092_v4 = vld [vmem:[#allocation2 + $0x10] sm:$0xff]   ;;  %vm417_vm1 = vcmask 392192  }
  0x5b   : > { %987 = vmatprep.subr.bf16.mxu1 %v1223_v0  ;;  %1003 = vmatprep.mubr.msk.bf16.mxu1 %vm1224_vm0, %v1223_v0  ;;  %v1095_v5 = vld [vmem:[%s1495_s3 + $0x8] sm:$0xff]   ;;  %v1096_v7 = vld [vmem:[%s1495_s3 + $0x10] sm:$0xff]   ;;  %v1097_v8 = vld [vmem:[%s1495_s3 + $0x18] sm:$0xff]  }
  0x5c   : > { %s1512_s17 = smov (!%p367_p5, %s907_s17), 3  ;;  %978 = vmatpush3.bf16.msra.mxu0 %v1090_v1  ;;  %988 = vmatpush3.bf16.msra.mxu1 %v1094_v3  ;;  %v1098_v9 = vld [vmem:[%s1495_s3 + $0x20] sm:$0xff]   ;;  %v1099_v10 = vld [vmem:[%s1495_s3 + $0x28] sm:$0xff]   ;;  %v1100_v11 = vld [vmem:[%s1495_s3 + $0x30] sm:$0xff]  }
  0x5d   : > { %s908_s13 = sshll.u32 %s1512_s17, 2  ;;  %979 = vmatprep.subr.bf16.mxu0 %v1223_v0  ;;  %989 = vmatprep.subr.bf16.mxu1 %v1223_v0  ;;  %v1101_v12 = vld [vmem:[%s1495_s3 + $0x38] sm:$0xff]   ;;  %v1102_v13 = vld [vmem:[%s1497_s5] sm:$0xff]   ;;  %v1103_v14 = vld [vmem:[%s1497_s5 + $0x8] sm:$0xff]   ;;  %s910_s14 = sshll.u32 %s1512_s17, 3 }
  0x5e   : > { %s370_s19 = scalar_lea.vmem %s1492_s0, %s908_s13  ;;  %v1104_v15 = vld [vmem:[%s1497_s5 + $0x10] sm:$0xff]   ;;  %v1105_v16 = vld [vmem:[%s1497_s5 + $0x18] sm:$0xff]   ;;  %v1106_v17 = vld [vmem:[%s1497_s5 + $0x20] sm:$0xff]   ;;  %s376_s29 = scalar_lea.vmem %s1501_s9, %s910_s14 }
  0x5f   : > { %v1093_v6 = vld [vmem:[%s370_s19] sm:$0xff]   ;;  %v1107_v18 = vld [vmem:[%s1497_s5 + $0x28] sm:$0xff]   ;;  %v911_v19 = vld [vmem:[#allocation4] ss:$0 sm:$0xff] }
  0x60   : > { %980 = vmatpush3.bf16.msra.mxu0 %v1091_v2  ;;  %990 = vmatpush3.bf16.msra.mxu1 %v1095_v5  ;;  %v1108_v29 = vld [vmem:[%s1497_s5 + $0x30] sm:$0xff]   ;;  %v1109_v30 = vld [vmem:[%s1497_s5 + $0x38] sm:$0xff]   ;;  %v1111_v32 = vld [vmem:[#allocation6 + $0x8] sm:$0xff]  }
  0x61   : > { %981 = vmatprep.subr.bf16.mxu0 %v1223_v0  ;;  %991 = vmatprep.subr.bf16.mxu1 %v1223_v0  ;;  %v1110_v31 = vld [vmem:[#allocation6] sm:$0xff]   ;;  %v1112_v33 = vld [vmem:[#allocation6 + $0x10] sm:$0xff]   ;;  %v1113_v34 = vld [vmem:[#allocation6 + $0x18] sm:$0xff]  }
  0x62   : > { %v1114_v35 = vld [vmem:[#allocation6 + $0x20] sm:$0xff]   ;;  %v1115_v36 = vld [vmem:[#allocation6 + $0x28] sm:$0xff]   ;;  %v1116_v47 = vld [vmem:[#allocation6 + $0x30] sm:$0xff]  }
  0x63   : > { %v917_v37 = vld [vmem:[%s1496_s4] ss:$0 sm:$0xff]  ;;  %v1117_v48 = vld [vmem:[#allocation6 + $0x38] sm:$0xff]  }
  0x64   : > { %982 = vmatpush3.bf16.msra.mxu0 %v1092_v4  ;;  %992 = vmatpush3.bf16.msra.mxu1 %v1096_v7  ;;  %v926_v49 = vld [vmem:[%s1498_s6] ss:$0 sm:$0xff] }
  0x65   : > { %1007 = vmatprep.subr.bf16.mxu0 %v1223_v0  ;;  %993 = vmatprep.subr.bf16.mxu1 %v1223_v0  ;;  %v935_v59 = vld [vmem:[%s1500_s8] ss:$0 sm:$0xff] }
  0x67   : > { %984 = vmatmul.mubr.msk.bf16.vlgmr.msra.gmra.mrb[0].mxu0 %vm417_vm1, %v1093_v6 }
  0x68   : > { %1023 = vmatprep.mubr.msk.bf16.mxu0 %vm1224_vm0, %v1223_v0  ;;  %994 = vmatpush3.bf16.msra.mxu1 %v1097_v8 }
  0x69   : > { %995 = vmatprep.subr.bf16.mxu1 %v1223_v0  ;;  %1008 = vmatpush3.bf16.msra.mxu0 %v1102_v13 }
  0x6a   : > { %1009 = vmatprep.subr.bf16.mxu0 %v1223_v0 }
  0x6c   : > { %996 = vmatpush3.bf16.msra.mxu1 %v1098_v9 }
  0x6d   : > { %997 = vmatprep.subr.bf16.mxu1 %v1223_v0  ;;  %1010 = vmatpush3.bf16.msra.mxu0 %v1103_v14 }
  0x6e   : > { %1011 = vmatprep.subr.bf16.mxu0 %v1223_v0 }
  0x70   : > { %998 = vmatpush3.bf16.msra.mxu1 %v1099_v10 }
  0x71   : > { %999 = vmatprep.subr.bf16.mxu1 %v1223_v0  ;;  %1012 = vmatpush3.bf16.msra.mxu0 %v1104_v15 }
  0x72   : > { %1013 = vmatprep.subr.bf16.mxu0 %v1223_v0 }
  0x74   : > { %1000 = vmatpush3.bf16.msra.mxu1 %v1100_v11 }
  0x75   : > { %1001 = vmatprep.subr.bf16.mxu1 %v1223_v0  ;;  %1014 = vmatpush3.bf16.msra.mxu0 %v1105_v16 }
  0x76   : > { %1015 = vmatprep.subr.bf16.mxu0 %v1223_v0 }
  0x78   : > { %1002 = vmatpush3.bf16.msra.mxu1 %v1101_v12 }
  0x79   : > { %1027 = vmatprep.subr.bf16.mxu1 %v1223_v0  ;;  %1016 = vmatpush3.bf16.msra.mxu0 %v1106_v17 }
  0x7a   : > { %1017 = vmatprep.subr.bf16.mxu0 %v1223_v0 }
  0x7d   : > { %1018 = vmatpush3.bf16.msra.mxu0 %v1107_v18 }
  0x7e   : > { %1019 = vmatprep.subr.bf16.mxu0 %v1223_v0 }
  0x81   : > { %1020 = vmatpush3.bf16.msra.mxu0 %v1108_v29 }
  0x82   : > { %1021 = vmatprep.subr.bf16.mxu0 %v1223_v0 }
  0x85   : > { %1022 = vmatpush3.bf16.msra.mxu0 %v1109_v30 }
 0x13a   : > { %v455_v20 = vpop.f32.mrb[0].mxu0 }
 0x13b   : > { %v456_v21 = vadd.f32 %v911_v19, %v455_v20  ;;  %v985_v22 = vpop.f32.mrb[1].mxu0 }
 0x13c   : > { %v458_v23 = vpop.f32.mrb[2].mxu0 }
 0x13d   : > { %v459_v24 = vadd.f32 %v911_v19, %v458_v23  ;;  %v986_v25 = vpop.f32.mrb[3].mxu0  ;;  %v462_v26 = vmax.f32 %v456_v21, 0.0 }
 0x13f   : > { %v463_v27 = vmax.f32 %v459_v24, 0.0 }
 0x141   : > { %v464_v28 = vpack.c.bf16 %v463_v27, %v462_v26 }
 0x143   : > { %1004 = vmatmul.mubr.bf16.vlgmr.msra.gmra.mrb[0].mxu1 %v464_v28 }
 0x144   : > { %1043 = vmatprep.mubr.msk.bf16.mxu1 %vm1224_vm0, %v1223_v0  ;;  %1028 = vmatpush3.bf16.msra.mxu1 %v1110_v31 }
 0x145   : > { %1029 = vmatprep.subr.bf16.mxu1 %v1223_v0 }
 0x148   : > { %1030 = vmatpush3.bf16.msra.mxu1 %v1111_v32 }
 0x149   : > { %1031 = vmatprep.subr.bf16.mxu1 %v1223_v0 }
 0x14c   : > { %1032 = vmatpush3.bf16.msra.mxu1 %v1112_v33 }
 0x14d   : > { %1033 = vmatprep.subr.bf16.mxu1 %v1223_v0 }
 0x150   : > { %1034 = vmatpush3.bf16.msra.mxu1 %v1113_v34 }
 0x151   : > { %1035 = vmatprep.subr.bf16.mxu1 %v1223_v0 }
 0x154   : > { %1036 = vmatpush3.bf16.msra.mxu1 %v1114_v35 }
 0x155   : > { %1037 = vmatprep.subr.bf16.mxu1 %v1223_v0 }
 0x158   : > { %1038 = vmatpush3.bf16.msra.mxu1 %v1115_v36 }
 0x159   : > { %1039 = vmatprep.subr.bf16.mxu1 %v1223_v0 }
 0x15c   : > { %1040 = vmatpush3.bf16.msra.mxu1 %v1116_v47 }
 0x15d   : > { %1041 = vmatprep.subr.bf16.mxu1 %v1223_v0 }
 0x160   : > { %1042 = vmatpush3.bf16.msra.mxu1 %v1117_v48 }
 0x216   : > { %v570_v38 = vpop.f32.mrb[0].mxu1 }
 0x217   : > { %v571_v39 = vadd.f32 %v917_v37, %v570_v38  ;;  %v1005_v40 = vpop.f32.mrb[1].mxu1 }
 0x218   : > { %v573_v41 = vpop.f32.mrb[2].mxu1 }
 0x219   : > { %v574_v42 = vadd.f32 %v917_v37, %v573_v41  ;;  %v1006_v43 = vpop.f32.mrb[3].mxu1  ;;  %v577_v44 = vmax.f32 %v571_v39, 0.0 }
 0x21b   : > { %v578_v45 = vmax.f32 %v574_v42, 0.0 }
 0x21d   : > { %v579_v46 = vpack.c.bf16 %v578_v45, %v577_v44 }
 0x21f   : > { %1024 = vmatmul.mubr.bf16.vlgmr.msra.gmra.mrb[4].mxu0 %v579_v46 }
 0x2f2   : > { %v685_v50 = vpop.f32.mrb[4].mxu0 }
 0x2f3   : > { %v686_v51 = vadd.f32 %v926_v49, %v685_v50  ;;  %v1025_v52 = vpop.f32.mrb[5].mxu0 }
 0x2f4   : > { %v688_v53 = vpop.f32.mrb[6].mxu0 }
 0x2f5   : > { %v689_v54 = vadd.f32 %v926_v49, %v688_v53  ;;  %v1026_v55 = vpop.f32.mrb[7].mxu0  ;;  %v692_v56 = vmax.f32 %v686_v51, 0.0 }
 0x2f7   : > { %v693_v57 = vmax.f32 %v689_v54, 0.0 }
 0x2f9   : > { %v694_v58 = vpack.c.bf16 %v693_v57, %v692_v56 }
 0x2fb   : > { %1044 = vmatmul.mubr.bf16.vlgmr.msra.gmra.mrb[4].mxu1 %v694_v58 }
 0x3ce   : > { %v800_v60 = vpop.f32.mrb[4].mxu1 }
 0x3cf   : > { %v801_v61 = vadd.f32 %v935_v59, %v800_v60  ;;  %v1045_v62 = vpop.f32.mrb[5].mxu1 }
 0x3d0   : > { %v803_v63 = vpop.f32.mrb[6].mxu1 }
 0x3d1   : > { %807 = vst [vmem:[%s376_s29] sm:$0xff] %v801_v61  ;;  %v804_v0 = vadd.f32 %v935_v59, %v803_v63  ;;  %v1046_v1 = vpop.f32.mrb[7].mxu1 }
 0x3d3   : > { %808 = vst [vmem:[%s376_s29 + $0x8] sm:$0xff] %v804_v0 }
 0x3d4 PF: > { %s21_s30 = sadd.s32 1, %s1216_s30  }
 0x3d5   : > { %p18_p7 = scmp.ge.s32.totalorder %s21_s30, 4  }
 0x3d7   :  { %20 = sbr.rel (!%p18_p7) target bundleno = 2 (0x2), region = 99 }
 0x3de   :  { %831 = vsyncpa [#allocation3], 1 }
 0x3df   :  { %833 = vsyncpa [#allocation3 + $0x1], 1 }
 0x3e0   :  { %834 = vsyncpa [#allocation5], 1 }

</bundles_post_ra>
